<compile_context>
chip_gen: v6e
topology: v6e:2x2x1
jax: 0.10.0
libtpu: 0.0.40
codegen_flags: <defaults>
</compile_context>

<pallas_src>
import jax
import jax.numpy as jnp
from jax.experimental import pallas as pl
from jax.experimental.pallas import tpu as pltpu

IN_FEATURES = 28 * 28    # 784
HIDDEN = 64
OUT_FEATURES = 10
OUT_PADDED = 128         # lane-dense output width (avoids masked vst)
TB_MAX = 512             # batch tile (multiple of 8); sized for v7x VMEM
NEG_INF = -1e30


def _round_up(n, m):
    return ((n + m - 1) // m) * m


def _mlp_kernel(x_ref,
                w1_ref, b1_ref,
                w2_ref, b2_ref,
                w3_ref, b3_ref,
                w4_ref, b4_ref,
                o_ref):
    # x / weights are bf16 (MXU path); biases + elementwise math stay f32.
    x = x_ref[...]
    b1 = b1_ref[...]
    b2 = b2_ref[...]
    b3 = b3_ref[...]
    b4 = b4_ref[...]

    h = jnp.dot(x, w1_ref[...], preferred_element_type=jnp.float32) + b1
    h = jnp.maximum(h, 0.0).astype(jnp.bfloat16)
    h = jnp.dot(h, w2_ref[...], preferred_element_type=jnp.float32) + b2
    h = jnp.maximum(h, 0.0).astype(jnp.bfloat16)
    h = jnp.dot(h, w3_ref[...], preferred_element_type=jnp.float32) + b3
    h = jnp.maximum(h, 0.0).astype(jnp.bfloat16)
    logits = jnp.dot(h, w4_ref[...], preferred_element_type=jnp.float32) + b4

    # Numerically stable log_softmax over dim=1. Padded columns carry a
    # -1e30 bias -> exp == 0, so cols [0, 10) match the un-padded softmax.
    m = jnp.max(logits, axis=1, keepdims=True)
    shifted = logits - m
    lse = jnp.log(jnp.sum(jnp.exp(shifted), axis=1, keepdims=True))
    o_ref[...] = shifted - lse


def mlp_forward(x, params):
    """x: [B, 784] float32; params: w1..w4 stored [in, out], b1..b4 [1, out]."""
    batch = x.shape[0]
    tb = min(TB_MAX, _round_up(max(batch, 1), 8))
    b_pad = _round_up(batch, tb)

    x_bf16 = x.astype(jnp.bfloat16)
    if b_pad != batch:
        x_bf16 = jnp.pad(x_bf16, ((0, b_pad - batch), (0, 0)))

    # MXU operands in bf16; pad fc4 to 128 output lanes.
    w1 = params["w1"].astype(jnp.bfloat16)
    w2 = params["w2"].astype(jnp.bfloat16)
    w3 = params["w3"].astype(jnp.bfloat16)
    w4 = jnp.pad(params["w4"],
                 ((0, 0), (0, OUT_PADDED - OUT_FEATURES))).astype(jnp.bfloat16)
    b1 = params["b1"].astype(jnp.float32)
    b2 = params["b2"].astype(jnp.float32)
    b3 = params["b3"].astype(jnp.float32)
    b4 = jnp.pad(params["b4"].astype(jnp.float32),
                 ((0, 0), (0, OUT_PADDED - OUT_FEATURES)),
                 constant_values=NEG_INF)

    grid = (b_pad // tb,)
    resident = lambda i: (0, 0)   # one block, DMA'd once, VMEM-resident

    out = pl.pallas_call(
        _mlp_kernel,
        out_shape=jax.ShapeDtypeStruct((b_pad, OUT_PADDED), jnp.float32),
        grid=grid,
        in_specs=[
            pl.BlockSpec((tb, IN_FEATURES), lambda i: (i, 0)),
            pl.BlockSpec((IN_FEATURES, HIDDEN), resident),
            pl.BlockSpec((1, HIDDEN), resident),
            pl.BlockSpec((HIDDEN, HIDDEN), resident),
            pl.BlockSpec((1, HIDDEN), resident),
            pl.BlockSpec((HIDDEN, HIDDEN), resident),
            pl.BlockSpec((1, HIDDEN), resident),
            pl.BlockSpec((HIDDEN, OUT_PADDED), resident),
            pl.BlockSpec((1, OUT_PADDED), resident),
        ],
        out_specs=pl.BlockSpec((tb, OUT_PADDED), lambda i: (i, 0)),
        compiler_params=pltpu.CompilerParams(
            dimension_semantics=("parallel",)),
    )(x_bf16, w1, b1, w2, b2, w3, b3, w4, b4)

    return out[:batch, :OUT_FEATURES]


def init_params(key):
    """Deterministic init mimicking PyTorch nn.Linear (uniform +/- 1/sqrt(fan_in))."""
    dims = [(IN_FEATURES, HIDDEN), (HIDDEN, HIDDEN),
            (HIDDEN, HIDDEN), (HIDDEN, OUT_FEATURES)]
    params = {}
    for i, (fan_in, fan_out) in enumerate(dims, start=1):
        key, kw, kb = jax.random.split(key, 3)
        bound = 1.0 / jnp.sqrt(fan_in)
        # stored as [in, out] (transpose of PyTorch's [out, in])
        params[f"w{i}"] = jax.random.uniform(
            kw, (fan_in, fan_out), jnp.float32, -bound, bound)
        params[f"b{i}"] = jax.random.uniform(
            kb, (1, fan_out), jnp.float32, -bound, bound)
    return params


def reference_forward(x, params):
    """Pure-JAX reference following the same bf16-matmul / f32-accum recipe."""
    def dot(a, w):
        return jnp.dot(a.astype(jnp.bfloat16), w.astype(jnp.bfloat16),
                       preferred_element_type=jnp.float32)
    h = jnp.maximum(dot(x, params["w1"]) + params["b1"], 0.0)
    h = jnp.maximum(dot(h, params["w2"]) + params["b2"], 0.0)
    h = jnp.maximum(dot(h, params["w3"]) + params["b3"], 0.0)
    logits = dot(h, params["w4"]) + params["b4"]
    return jax.nn.log_softmax(logits, axis=1)


if __name__ == "__main__":
    key = jax.random.PRNGKey(0)
    k_params, k_x = jax.random.split(key)

    params = init_params(k_params)
    batch = 8
    x = jax.random.normal(k_x, (batch, IN_FEATURES), jnp.float32)

    out = mlp_forward(x, params)
    out = jax.block_until_ready(out)

    # sanity check against pure-JAX reference (same bf16/f32 numerics)
    ref = reference_forward(x, params)
    assert out.shape == (batch, OUT_FEATURES)
    assert jnp.allclose(out, ref, atol=1e-2, rtol=1e-2), "mismatch vs reference"
    # rows must be valid log-probabilities
    assert jnp.allclose(jnp.sum(jnp.exp(out), axis=1), 1.0, atol=1e-3)

    print("KERNEL_OK")
</pallas_src>

<mosaic_0001>
module attributes {stable_mosaic.version = 11 : i64} {
  func.func @_mlp_kernel(%arg0: i32, %arg1: memref<8x784xbf16, #tpu.memory_space<vmem>>, %arg2: memref<784x64xbf16, #tpu.memory_space<vmem>>, %arg3: memref<1x64xf32, #tpu.memory_space<vmem>>, %arg4: memref<64x64xbf16, #tpu.memory_space<vmem>>, %arg5: memref<1x64xf32, #tpu.memory_space<vmem>>, %arg6: memref<64x64xbf16, #tpu.memory_space<vmem>>, %arg7: memref<1x64xf32, #tpu.memory_space<vmem>>, %arg8: memref<64x128xbf16, #tpu.memory_space<vmem>>, %arg9: memref<1x128xf32, #tpu.memory_space<vmem>>, %arg10: memref<8x128xf32, #tpu.memory_space<vmem>>) attributes {dimension_semantics = [#tpu.dimension_semantics<parallel>], iteration_bounds = array<i64: 1>, scalar_prefetch = 0 : i64, scratch_operands = 0 : i64, tpu.core_type = #tpu.core_type<tc>, window_params = [{transform_indices = @transform_0, window_bounds = array<i64: 8, 784>}, {pipeline_mode = #tpu.pipeline_mode<synchronous>, transform_indices = @transform_1, window_bounds = array<i64: 784, 64>}, {pipeline_mode = #tpu.pipeline_mode<synchronous>, transform_indices = @transform_2, window_bounds = array<i64: 1, 64>}, {pipeline_mode = #tpu.pipeline_mode<synchronous>, transform_indices = @transform_3, window_bounds = array<i64: 64, 64>}, {pipeline_mode = #tpu.pipeline_mode<synchronous>, transform_indices = @transform_4, window_bounds = array<i64: 1, 64>}, {pipeline_mode = #tpu.pipeline_mode<synchronous>, transform_indices = @transform_5, window_bounds = array<i64: 64, 64>}, {pipeline_mode = #tpu.pipeline_mode<synchronous>, transform_indices = @transform_6, window_bounds = array<i64: 1, 64>}, {pipeline_mode = #tpu.pipeline_mode<synchronous>, transform_indices = @transform_7, window_bounds = array<i64: 64, 128>}, {pipeline_mode = #tpu.pipeline_mode<synchronous>, transform_indices = @transform_8, window_bounds = array<i64: 1, 128>}, {transform_indices = @transform_9, window_bounds = array<i64: 8, 128>}]} {
    %c0 = arith.constant 0 : index
    %c0_0 = arith.constant 0 : index
    %0 = vector.load %arg1[%c0, %c0_0] : memref<8x784xbf16, #tpu.memory_space<vmem>>, vector<8x784xbf16>
    %c0_1 = arith.constant 0 : index
    %c0_2 = arith.constant 0 : index
    %1 = vector.load %arg3[%c0_1, %c0_2] : memref<1x64xf32, #tpu.memory_space<vmem>>, vector<1x64xf32>
    %c0_3 = arith.constant 0 : index
    %c0_4 = arith.constant 0 : index
    %2 = vector.load %arg5[%c0_3, %c0_4] : memref<1x64xf32, #tpu.memory_space<vmem>>, vector<1x64xf32>
    %c0_5 = arith.constant 0 : index
    %c0_6 = arith.constant 0 : index
    %3 = vector.load %arg7[%c0_5, %c0_6] : memref<1x64xf32, #tpu.memory_space<vmem>>, vector<1x64xf32>
    %c0_7 = arith.constant 0 : index
    %c0_8 = arith.constant 0 : index
    %4 = vector.load %arg9[%c0_7, %c0_8] : memref<1x128xf32, #tpu.memory_space<vmem>>, vector<1x128xf32>
    %c0_9 = arith.constant 0 : index
    %c0_10 = arith.constant 0 : index
    %5 = vector.load %arg2[%c0_9, %c0_10] : memref<784x64xbf16, #tpu.memory_space<vmem>>, vector<784x64xbf16>
    %cst = arith.constant dense<0.000000e+00> : vector<8x64xf32>
    %6 = tpu.matmul %0, %5, %cst {dimension_numbers = #tpu.dot_dimension_numbers<[1], [0], [0], [1], [0, 0, 1, 1], [], []>} : vector<8x784xbf16>, vector<784x64xbf16>, vector<8x64xf32> -> vector<8x64xf32>
    %7 = vector.broadcast %1 : vector<1x64xf32> to vector<8x64xf32>
    %8 = arith.addf %6, %7 : vector<8x64xf32>
    %cst_11 = arith.constant 0.000000e+00 : f32
    %9 = vector.broadcast %cst_11 : f32 to vector<8x64xf32>
    %10 = arith.maximumf %8, %9 : vector<8x64xf32>
    %11 = arith.truncf %10 : vector<8x64xf32> to vector<8x64xbf16>
    %c0_12 = arith.constant 0 : index
    %c0_13 = arith.constant 0 : index
    %12 = vector.load %arg4[%c0_12, %c0_13] : memref<64x64xbf16, #tpu.memory_space<vmem>>, vector<64x64xbf16>
    %cst_14 = arith.constant dense<0.000000e+00> : vector<8x64xf32>
    %13 = tpu.matmul %11, %12, %cst_14 {dimension_numbers = #tpu.dot_dimension_numbers<[1], [0], [0], [1], [0, 0, 1, 1], [], []>} : vector<8x64xbf16>, vector<64x64xbf16>, vector<8x64xf32> -> vector<8x64xf32>
    %14 = vector.broadcast %2 : vector<1x64xf32> to vector<8x64xf32>
    %15 = arith.addf %13, %14 : vector<8x64xf32>
    %cst_15 = arith.constant 0.000000e+00 : f32
    %16 = vector.broadcast %cst_15 : f32 to vector<8x64xf32>
    %17 = arith.maximumf %15, %16 : vector<8x64xf32>
    %18 = arith.truncf %17 : vector<8x64xf32> to vector<8x64xbf16>
    %c0_16 = arith.constant 0 : index
    %c0_17 = arith.constant 0 : index
    %19 = vector.load %arg6[%c0_16, %c0_17] : memref<64x64xbf16, #tpu.memory_space<vmem>>, vector<64x64xbf16>
    %cst_18 = arith.constant dense<0.000000e+00> : vector<8x64xf32>
    %20 = tpu.matmul %18, %19, %cst_18 {dimension_numbers = #tpu.dot_dimension_numbers<[1], [0], [0], [1], [0, 0, 1, 1], [], []>} : vector<8x64xbf16>, vector<64x64xbf16>, vector<8x64xf32> -> vector<8x64xf32>
    %21 = vector.broadcast %3 : vector<1x64xf32> to vector<8x64xf32>
    %22 = arith.addf %20, %21 : vector<8x64xf32>
    %cst_19 = arith.constant 0.000000e+00 : f32
    %23 = vector.broadcast %cst_19 : f32 to vector<8x64xf32>
    %24 = arith.maximumf %22, %23 : vector<8x64xf32>
    %25 = arith.truncf %24 : vector<8x64xf32> to vector<8x64xbf16>
    %c0_20 = arith.constant 0 : index
    %c0_21 = arith.constant 0 : index
    %26 = vector.load %arg8[%c0_20, %c0_21] : memref<64x128xbf16, #tpu.memory_space<vmem>>, vector<64x128xbf16>
    %cst_22 = arith.constant dense<0.000000e+00> : vector<8x128xf32>
    %27 = tpu.matmul %25, %26, %cst_22 {dimension_numbers = #tpu.dot_dimension_numbers<[1], [0], [0], [1], [0, 0, 1, 1], [], []>} : vector<8x64xbf16>, vector<64x128xbf16>, vector<8x128xf32> -> vector<8x128xf32>
    %28 = vector.broadcast %4 : vector<1x128xf32> to vector<8x128xf32>
    %29 = arith.addf %27, %28 : vector<8x128xf32>
    %cst_23 = arith.constant dense<0xFF800000> : vector<8xf32>
    %30 = vector.multi_reduction <maximumf>, %29, %cst_23 [1] : vector<8x128xf32> to vector<8xf32>
    %31 = vector.shape_cast %30 : vector<8xf32> to vector<8x1xf32>
    %32 = vector.broadcast %31 : vector<8x1xf32> to vector<8x128xf32>
    %33 = arith.subf %29, %32 : vector<8x128xf32>
    %34 = math.exp %33 : vector<8x128xf32>
    %cst_24 = arith.constant dense<0.000000e+00> : vector<8xf32>
    %35 = vector.multi_reduction <add>, %34, %cst_24 [1] : vector<8x128xf32> to vector<8xf32>
    %36 = vector.shape_cast %35 : vector<8xf32> to vector<8x1xf32>
    %37 = math.log %36 : vector<8x1xf32>
    %38 = vector.broadcast %37 : vector<8x1xf32> to vector<8x128xf32>
    %39 = arith.subf %33, %38 : vector<8x128xf32>
    %c0_25 = arith.constant 0 : index
    %c0_26 = arith.constant 0 : index
    %40 = vector.load %arg10[%c0_25, %c0_26] : memref<8x128xf32, #tpu.memory_space<vmem>>, vector<8x128xf32>
    tpu.vector_store %arg10[%c0_25, %c0_26], %39 {strides = array<i32>} : memref<8x128xf32, #tpu.memory_space<vmem>>, vector<8x128xf32>,
    return
  }
  func.func @transform_0(%arg0: i32) -> (i32, i32) {
    %c0_i32 = arith.constant 0 : i32
    %c0_i32_0 = arith.constant 0 : i32
    return %arg0, %c0_i32 : i32, i32
  }
  func.func @transform_1(%arg0: i32) -> (i32, i32) {
    %c0_i32 = arith.constant 0 : i32
    %c0_i32_0 = arith.constant 0 : i32
    %c0_i32_1 = arith.constant 0 : i32
    return %c0_i32, %c0_i32_0 : i32, i32
  }
  func.func @transform_2(%arg0: i32) -> (i32, i32) {
    %c0_i32 = arith.constant 0 : i32
    %c0_i32_0 = arith.constant 0 : i32
    %c0_i32_1 = arith.constant 0 : i32
    return %c0_i32, %c0_i32_0 : i32, i32
  }
  func.func @transform_3(%arg0: i32) -> (i32, i32) {
    %c0_i32 = arith.constant 0 : i32
    %c0_i32_0 = arith.constant 0 : i32
    %c0_i32_1 = arith.constant 0 : i32
    return %c0_i32, %c0_i32_0 : i32, i32
  }
  func.func @transform_4(%arg0: i32) -> (i32, i32) {
    %c0_i32 = arith.constant 0 : i32
    %c0_i32_0 = arith.constant 0 : i32
    %c0_i32_1 = arith.constant 0 : i32
    return %c0_i32, %c0_i32_0 : i32, i32
  }
  func.func @transform_5(%arg0: i32) -> (i32, i32) {
    %c0_i32 = arith.constant 0 : i32
    %c0_i32_0 = arith.constant 0 : i32
    %c0_i32_1 = arith.constant 0 : i32
    return %c0_i32, %c0_i32_0 : i32, i32
  }
  func.func @transform_6(%arg0: i32) -> (i32, i32) {
    %c0_i32 = arith.constant 0 : i32
    %c0_i32_0 = arith.constant 0 : i32
    %c0_i32_1 = arith.constant 0 : i32
    return %c0_i32, %c0_i32_0 : i32, i32
  }
  func.func @transform_7(%arg0: i32) -> (i32, i32) {
    %c0_i32 = arith.constant 0 : i32
    %c0_i32_0 = arith.constant 0 : i32
    %c0_i32_1 = arith.constant 0 : i32
    return %c0_i32, %c0_i32_0 : i32, i32
  }
  func.func @transform_8(%arg0: i32) -> (i32, i32) {
    %c0_i32 = arith.constant 0 : i32
    %c0_i32_0 = arith.constant 0 : i32
    %c0_i32_1 = arith.constant 0 : i32
    return %c0_i32, %c0_i32_0 : i32, i32
  }
  func.func @transform_9(%arg0: i32) -> (i32, i32) {
    %c0_i32 = arith.constant 0 : i32
    %c0_i32_0 = arith.constant 0 : i32
    return %arg0, %c0_i32 : i32, i32
  }
}

</mosaic_0001>

<bundles_post_ra>
// kernel: tpu_custom_call.1
= control target key start
LH: loop header
LB: loop body
LE: loop exit
PB: predicated region body
PF: predicated region fallthrough
CT: control target
= control target key end

     0   :  { %v1201_v43 = vmov 0.0   ;;  %vm1202_vm0 = vmmov 0   ;;  %vm464_vm1 = vcmask 130048   ;;  %s1488_s0 = inlined_call_operand.vmem [shape: bf16[8,784], index: 0, kind: input, shape index: {}]   ;;  %s1489_s1 = inlined_call_operand.vmem [shape: bf16[784,64], index: 1, kind: input, shape index: {}]   ;;  %s1490_s2 = inlined_call_operand.vmem [shape: f32[1,64], index: 2, kind: input, shape index: {}]   ;;  %s1491_s3 = inlined_call_operand.vmem [shape: bf16[64,64], index: 3, kind: input, shape index: {}]   ;;  %s1492_s4 = inlined_call_operand.vmem [shape: f32[1,64], index: 4, kind: input, shape index: {}]   ;;  %s1493_s5 = inlined_call_operand.vmem [shape: bf16[64,64], index: 5, kind: input, shape index: {}]   ;;  %s1494_s6 = inlined_call_operand.vmem [shape: f32[1,64], index: 6, kind: input, shape index: {}]   ;;  %s1495_s7 = inlined_call_operand.vmem [shape: bf16[64,128], index: 7, kind: input, shape index: {}]   ;;  %s1496_s8 = inlined_call_operand.vmem [shape: f32[1,128], index: 8, kind: input, shape index: {}]   ;;  %s1497_s9 = inlined_call_operand.hbm [shape: f32[8,128], index: 9, kind: output, shape index: {}]  }
   0x1   :  { %v1107_v0 = vld [vmem:[%s1489_s1 + $0x78] sm:$0xff]   ;;  %v1111_v4 = vld [vmem:[%s1489_s1 + $0x70] sm:$0xff]   ;;  %v1115_v8 = vld [vmem:[%s1489_s1 + $0x68] sm:$0xff]  }
   0x2   :  { %v1108_v1 = vld [vmem:[%s1489_s1 + $0x38] sm:$0xff]   ;;  %979 = vmatprep.subr.bf16.mxu0 %v1107_v0  ;;  %v1112_v5 = vld [vmem:[%s1489_s1 + $0x30] sm:$0xff]   ;;  %v1116_v9 = vld [vmem:[%s1489_s1 + $0x28] sm:$0xff]  }
   0x3   :  { %v1109_v2 = vld [vmem:[%s1489_s1 + $0xf8] sm:$0xff]   ;;  %980 = vmatpush3.bf16.msra.mxu0 %v1108_v1  ;;  %v1113_v6 = vld [vmem:[%s1489_s1 + $0xf0] sm:$0xff]   ;;  %v1117_v10 = vld [vmem:[%s1489_s1 + $0xe8] sm:$0xff]  }
   0x4   :  { %v1110_v3 = vld [vmem:[%s1489_s1 + $0xb8] sm:$0xff]   ;;  %1001 = vmatprep.subr.bf16.mxu1 %v1109_v2  ;;  %981 = vmatprep.subr.bf16.mxu0 %v1111_v4  ;;  %v1114_v7 = vld [vmem:[%s1489_s1 + $0xb0] sm:$0xff]   ;;  %v1118_v11 = vld [vmem:[%s1489_s1 + $0xa8] sm:$0xff]  }
   0x5   :  { %1002 = vmatpush3.bf16.msra.mxu1 %v1110_v3  ;;  %v1119_v12 = vld [vmem:[%s1489_s1 + $0x60] sm:$0xff]   ;;  %v1123_v16 = vld [vmem:[%s1489_s1 + $0x58] sm:$0xff]   ;;  %v1127_v20 = vld [vmem:[%s1489_s1 + $0x50] sm:$0xff]  }
   0x6   :  { %1003 = vmatprep.subr.bf16.mxu1 %v1113_v6  ;;  %v1120_v13 = vld [vmem:[%s1489_s1 + $0x20] sm:$0xff]   ;;  %v1124_v17 = vld [vmem:[%s1489_s1 + $0x18] sm:$0xff]   ;;  %v1128_v21 = vld [vmem:[%s1489_s1 + $0x10] sm:$0xff]  }
   0x7   :  { %982 = vmatpush3.bf16.msra.mxu0 %v1112_v5  ;;  %v1121_v14 = vld [vmem:[%s1489_s1 + $0xe0] sm:$0xff]   ;;  %v1125_v18 = vld [vmem:[%s1489_s1 + $0xd8] sm:$0xff]   ;;  %v1129_v22 = vld [vmem:[%s1489_s1 + $0xd0] sm:$0xff]  }
   0x8   :  { %983 = vmatprep.subr.bf16.mxu0 %v1115_v8  ;;  %v1122_v15 = vld [vmem:[%s1489_s1 + $0xa0] sm:$0xff]   ;;  %v1126_v19 = vld [vmem:[%s1489_s1 + $0x98] sm:$0xff]   ;;  %v1130_v23 = vld [vmem:[%s1489_s1 + $0x90] sm:$0xff]  }
   0x9   :  { %1004 = vmatpush3.bf16.msra.mxu1 %v1114_v7  ;;  %v1131_v24 = vld [vmem:[%s1489_s1 + $0x48] sm:$0xff]   ;;  %v1135_v28 = vld [vmem:[%s1489_s1 + $0x40] sm:$0xff]   ;;  %v1141_v35 = vld [vmem:[%s1489_s1 + $0x178] sm:$0xff]  }
   0xa   :  { %1005 = vmatprep.subr.bf16.mxu1 %v1117_v10  ;;  %v1132_v25 = vld [vmem:[%s1489_s1 + $0x8] sm:$0xff]   ;;  %v1136_v29 = vld [vmem:[%s1489_s1] sm:$0xff]   ;;  %v1144_v39 = vld [vmem:[%s1489_s1 + $0x138] sm:$0xff]  }
   0xb   :  { %984 = vmatpush3.bf16.msra.mxu0 %v1116_v9  ;;  %v1133_v26 = vld [vmem:[%s1489_s1 + $0xc8] sm:$0xff]   ;;  %v1137_v30 = vld [vmem:[%s1489_s1 + $0xc0] sm:$0xff]   ;;  %v1145_v40 = vld [vmem:[%s1489_s1 + $0x170] sm:$0xff]  }
   0xc   :  { %985 = vmatprep.subr.bf16.mxu0 %v1119_v12  ;;  %v1134_v27 = vld [vmem:[%s1489_s1 + $0x88] sm:$0xff]   ;;  %v34_v31 = vld [vmem:[%s1488_s0] sm:$0xff]  ;;  %v1146_v41 = vld [vmem:[%s1489_s1 + $0x130] sm:$0xff]  }
   0xd   :  { %1006 = vmatpush3.bf16.msra.mxu1 %v1118_v11  ;;  %v904_v32 = vcombine.low %v34_v31, %v34_v31  ;;  %v905_v33 = vcombine.high %v34_v31, %v34_v31  ;;  %v1140_v34 = vld [vmem:[%s1489_s1 + $0x80] sm:$0xff]   ;;  %v35_v36 = vld [vmem:[%s1488_s0 + $0x8] sm:$0xff]  ;;  %v1151_v47 = vld [vmem:[%s1489_s1 + $0x158] sm:$0xff]  }
   0xe   :  { %1007 = vmatprep.subr.bf16.mxu1 %v1121_v14  ;;  %v906_v37 = vcombine.low %v35_v36, %v35_v36  ;;  %v907_v38 = vcombine.high %v35_v36, %v35_v36  ;;  %v1147_v42 = vld [vmem:[%s1489_s1 + $0x168] sm:$0xff]   ;;  %v1149_v45 = vld [vmem:[%s1489_s1 + $0x160] sm:$0xff]   ;;  %v1152_v48 = vld [vmem:[%s1489_s1 + $0x118] sm:$0xff]  }
   0xf   :  { %986 = vmatpush3.bf16.msra.mxu0 %v1120_v13  ;;  %500 = vmatprep.mubr.bf16.mxu0 %v905_v33  ;;  %v1148_v44 = vld [vmem:[%s1489_s1 + $0x128] sm:$0xff]   ;;  %v1150_v46 = vld [vmem:[%s1489_s1 + $0x120] sm:$0xff]   ;;  %v1153_v49 = vld [vmem:[%s1489_s1 + $0x150] sm:$0xff]  }
  0x10   :  { %987 = vmatprep.subr.bf16.mxu0 %v1123_v16  ;;  %540 = vmatprep.mubr.bf16.mxu1 %v907_v38  ;;  %v1159_v50 = vld [vmem:[%s1489_s1 + $0x180] sm:$0xff]   ;;  %v36_v51 = vld [vmem:[%s1488_s0 + $0x10] sm:$0xff]  ;;  %v1162_v54 = vld [vmem:[%s1488_s0 + $0x18] ss:$0 sps:$4 sm:$0xff]  }
  0x11   :  { %1008 = vmatpush3.bf16.msra.mxu1 %v1122_v15  ;;  %v1154_v52 = vld [vmem:[%s1489_s1 + $0x110] sm:$0xff]   ;;  %v909_v53 = vcombine.high %v36_v51, %v36_v51  ;;  %v1155_v55 = vld [vmem:[%s1489_s1 + $0x148] sm:$0xff]   ;;  %v1157_v57 = vld [vmem:[%s1489_s1 + $0x140] sm:$0xff]  }
  0x12   :  { %1009 = vmatprep.subr.bf16.mxu1 %v1125_v18  ;;  %v1156_v56 = vld [vmem:[%s1489_s1 + $0x108] sm:$0xff]  }
  0x13   :  { %988 = vmatpush3.bf16.msra.mxu0 %v1124_v17 }
  0x14   :  { %989 = vmatprep.subr.bf16.mxu0 %v1127_v20 }
  0x15   :  { %1010 = vmatpush3.bf16.msra.mxu1 %v1126_v19 }
  0x16   :  { %1011 = vmatprep.subr.bf16.mxu1 %v1129_v22 }
  0x17   :  { %990 = vmatpush3.bf16.msra.mxu0 %v1128_v21 }
  0x18   :  { %991 = vmatprep.subr.bf16.mxu0 %v1131_v24 }
  0x19   :  { %1012 = vmatpush3.bf16.msra.mxu1 %v1130_v23 }
  0x1a   :  { %1013 = vmatprep.subr.bf16.mxu1 %v1133_v26 }
  0x1b   :  { %992 = vmatpush3.bf16.msra.mxu0 %v1132_v25 }
  0x1c   :  { %993 = vmatprep.subr.bf16.mxu0 %v1135_v28 }
  0x1d   :  { %1014 = vmatpush3.bf16.msra.mxu1 %v1134_v27 }
  0x1e   :  { %1015 = vmatprep.subr.bf16.mxu1 %v1137_v30 }
  0x1f   :  { %994 = vmatpush3.bf16.msra.mxu0 %v1136_v29 }
  0x20   :  { %1023 = vmatprep.subr.bf16.mxu0 %v1141_v35 }
  0x21   :  { %1016 = vmatpush3.bf16.msra.mxu1 %v1140_v34 }
  0x22   :  { %501 = vmatmul.mubr.bf16.vlgmr.msra.gmra.mxu0 %v904_v32  ;;  %1062 = vmatprep.subr.bf16.mxu1 %v1201_v43 }
  0x23   :  { %1024 = vmatpush3.bf16.msra.mxu0 %v1144_v39  ;;  %580 = vmatprep.mubr.bf16.mxu0 %v909_v53 }
  0x24   :  { %541 = vmatmul.mubr.bf16.vlgmr.msra.gmra.mxu1 %v906_v37  ;;  %1025 = vmatprep.subr.bf16.mxu0 %v1145_v40 }
  0x25   :  { %1064 = vmatprep.mubr.msk.bf16.mxu1 %vm1202_vm0, %v1201_v43  ;;  %1063 = vmatpush3.bf16.msra.mxu1 %v1159_v50 }
  0x26   :  { %1068 = vmatprep.subr.bf16.mxu1 %v1201_v43 }
  0x27   :  { %1026 = vmatpush3.bf16.msra.mxu0 %v1146_v41 }
  0x28   :  { %1027 = vmatprep.subr.bf16.mxu0 %v1147_v42 }
  0x2b   :  { %1028 = vmatpush3.bf16.msra.mxu0 %v1148_v44 }
  0x2c   :  { %1029 = vmatprep.subr.bf16.mxu0 %v1149_v45  ;;  %1065 = vmatmul.mubr.msk.bf16.vlgmr.msra.gmra.mxu1 %vm464_vm1, %v1162_v54 }
  0x2d   :  { %1076 = vmatprep.mubr.msk.bf16.mxu1 %vm1202_vm0, %v1201_v43 }
  0x2f   :  { %1030 = vmatpush3.bf16.msra.mxu0 %v1150_v46 }
  0x30   :  { %1031 = vmatprep.subr.bf16.mxu0 %v1151_v47 }
  0x33   :  { %1032 = vmatpush3.bf16.msra.mxu0 %v1152_v48 }
  0x34   :  { %1033 = vmatprep.subr.bf16.mxu0 %v1153_v49 }
  0x37   :  { %1034 = vmatpush3.bf16.msra.mxu0 %v1154_v52 }
  0x38   :  { %1035 = vmatprep.subr.bf16.mxu0 %v1155_v55 }
  0x39   :  { %14 = vsyncpa [#allocation3], 0  ;;  %v1158_v58 = vld [vmem:[%s1489_s1 + $0x100] sm:$0xff]   ;;  %v908_v59 = vcombine.low %v36_v51, %v36_v51  ;;  %v1163_v60 = vld [vmem:[%s1491_s3 + $0x18] sm:$0xff]   ;;  %vm668_vm2 = vcmask 523264  }
  0x3a   :  { %1069 = vmatpush3.bf16.msra.mxu1 %v1163_v60  ;;  %v1164_v61 = vld [vmem:[%s1491_s3 + $0x10] sm:$0xff]   ;;  %v1165_v62 = vld [vmem:[%s1491_s3 + $0x8] sm:$0xff]   ;;  %v1166_v63 = vld [vmem:[%s1491_s3] sm:$0xff]  }
  0x3b   :  { %1036 = vmatpush3.bf16.msra.mxu0 %v1156_v56  ;;  %1070 = vmatprep.subr.bf16.mxu1 %v1201_v43  ;;  %v903_v13 = vld [vmem:[%s1490_s2] ss:$0 sm:$0xff]  ;;  %v1167_v25 = vld [vmem:[%s1493_s5 + $0x18] sm:$0xff]   ;;  %v1168_v27 = vld [vmem:[%s1493_s5 + $0x10] sm:$0xff]  }
  0x3c   :  { %1037 = vmatprep.subr.bf16.mxu0 %v1157_v57  ;;  %v1169_v28 = vld [vmem:[%s1493_s5 + $0x8] sm:$0xff]   ;;  %v1170_v29 = vld [vmem:[%s1493_s5] sm:$0xff]   ;;  %v1171_v30 = vld [vmem:[%s1495_s7 + $0x18] sm:$0xff]  }
  0x3d   :  { %v1172_v31 = vld [vmem:[%s1495_s7 + $0x10] sm:$0xff]   ;;  %v961_v32 = vld [vmem:[%s1492_s4] ss:$0 sm:$0xff]  ;;  %v1173_v40 = vld [vmem:[%s1495_s7 + $0x8] sm:$0xff]  }
  0x3e   :  { %1071 = vmatpush3.bf16.msra.mxu1 %v1164_v61  ;;  %v1174_v41 = vld [vmem:[%s1495_s7] sm:$0xff]  }
  0x3f   :  { %1038 = vmatpush3.bf16.msra.mxu0 %v1158_v58  ;;  %1072 = vmatprep.subr.bf16.mxu1 %v1201_v43  ;;  %v967_v42 = vld [vmem:[%s1494_s6] ss:$0 sm:$0xff]  ;;  %s1203_s6 = smov [#allocation2]  }
  0x40   :  { %1092 = vmatprep.subr.bf16.mxu0 %v1201_v43  ;;  %s895_s7 = sshll.u32 %s1203_s6, 4  ;;  %s896_s7 = int_to_ptr.vmem [resolvable:$true] %s895_s7 }
  0x41   :  { %p1184_p1 = scmp.lt.s32.totalorder %s896_s7, %s896_s7 }
  0x42   :  { %581 = vmatmul.mubr.bf16.vlgmr.msra.gmra.mxu0 %v908_v59  ;;  %1073 = vmatpush3.bf16.msra.mxu1 %v1165_v62 }
  0x43   :  { %1100 = vmatprep.mubr.msk.bf16.mxu0 %vm1202_vm0, %v1201_v43  ;;  %1074 = vmatprep.subr.bf16.mxu1 %v1201_v43 }
  0x44   :  { %1093 = vmatpush3.bf16.msra.mxu0 %v1171_v30 }
  0x45   :  { %1094 = vmatprep.subr.bf16.mxu0 %v1201_v43 }
  0x46   :  { %1075 = vmatpush3.bf16.msra.mxu1 %v1166_v63 }
  0x47   :  { %1080 = vmatprep.subr.bf16.mxu1 %v1201_v43 }
  0x48   :  { %1095 = vmatpush3.bf16.msra.mxu0 %v1172_v31 }
  0x49   :  { %1096 = vmatprep.subr.bf16.mxu0 %v1201_v43 }
  0x4c   :  { %1097 = vmatpush3.bf16.msra.mxu0 %v1173_v40 }
  0x4d   :  { %1098 = vmatprep.subr.bf16.mxu0 %v1201_v43 }
  0x50   :  { %1099 = vmatpush3.bf16.msra.mxu0 %v1174_v41 }
  0xe2   :  { %v995_v0 = vpop.f32.mrf.mxu0 }
  0xe4   :  { %v996_v1 = vpop.f32.mrf.mxu0  ;;  %v1017_v2 = vpop.f32.mrf.mxu1 }
  0xe5   :  { %v997_v12 = vadd.f32 %v996_v1, %v995_v0 }
  0xe6   :  { %v998_v3 = vpop.f32.mrf.mxu0  ;;  %v1018_v4 = vpop.f32.mrf.mxu1 }
  0xe7   :  { %v503_v14 = vadd.f32 %v997_v12, %v903_v13  ;;  %v1019_v15 = vadd.f32 %v1018_v4, %v1017_v2 }
  0xe8   :  { %v999_v5 = vpop.f32.mrf.mxu0  ;;  %v1020_v6 = vpop.f32.mrf.mxu1 }
  0xe9   :  { %v543_v18 = vadd.f32 %v1019_v15, %v503_v14 }
  0xea   :  { %v1021_v7 = vpop.f32.mrf.mxu1 }
  0xec   :  { %v622_v8 = vpop.f32.mrf.mxu1 }
  0xee   :  { %v1066_v9 = vpop.f32.mrf.mxu1 }
  0xf0   :  { %v625_v10 = vpop.f32.mrf.mxu1 }
  0xf2   :  { %v1067_v11 = vpop.f32.mrf.mxu1 }
 0x102   :  { %v1039_v16 = vpop.f32.mrf.mxu0 }
 0x104   :  { %v1040_v17 = vpop.f32.mrf.mxu0 }
 0x105   :  { %v1041_v19 = vadd.f32 %v1040_v17, %v1039_v16 }
 0x106   :  { %v1042_v20 = vpop.f32.mrf.mxu0 }
 0x107   :  { %v583_v21 = vadd.f32 %v1041_v19, %v543_v18 }
 0x108   :  { %v1043_v22 = vpop.f32.mrf.mxu0 }
 0x109   :  { %v623_v23 = vadd.f32 %v622_v8, %v583_v21 }
 0x10b   :  { %v628_v24 = vmax.f32 %v623_v23, 0.0 }
 0x10d   :  { %v629_v26 = vpack.c.bf16 %v628_v24, %v628_v24 }
 0x10f   :  { %1077 = vmatmul.mubr.msk.bf16.vlgmr.msra.gmra.mxu1 %vm668_vm2, %v629_v26 }
 0x110   :  { %1081 = vmatpush3.bf16.msra.mxu1 %v1167_v25  ;;  %1088 = vmatprep.mubr.msk.bf16.mxu1 %vm1202_vm0, %v1201_v43 }
 0x111   :  { %1082 = vmatprep.subr.bf16.mxu1 %v1201_v43 }
 0x114   :  { %1083 = vmatpush3.bf16.msra.mxu1 %v1168_v27 }
 0x115   :  { %1084 = vmatprep.subr.bf16.mxu1 %v1201_v43 }
 0x118   :  { %1085 = vmatpush3.bf16.msra.mxu1 %v1169_v28 }
 0x119   :  { %1086 = vmatprep.subr.bf16.mxu1 %v1201_v43  ;;  %v973_v43 = vld [vmem:[%s1496_s8] ss:$0 sm:$0xff]  ;;  %s1179_s8 = scalar_lea.vmem %s896_s7, 128 }
 0x11a   :  { %p1180_p0 = scmp.ne.s32.totalorder %s896_s7, %s1179_s8  ;;  %p1185_p2 = scmp.lt.s32.totalorder %s1179_s8, %s1179_s8 }
 0x11c   :  { %1087 = vmatpush3.bf16.msra.mxu1 %v1170_v29  ;;  %p1186_p3 = por %p1185_p2, %p1184_p1 }
 0x11e   :  { %p1187_p4 = pnand %p1186_p3, %p1180_p0 }
 0x1cf   :  { %v706_v33 = vpop.f32.mrf.mxu1 }
 0x1d0   :  { %v707_v34 = vadd.f32 %v961_v32, %v706_v33 }
 0x1d1   :  { %v1078_v35 = vpop.f32.mrf.mxu1 }
 0x1d2   :  { %v712_v36 = vmax.f32 %v707_v34, 0.0 }
 0x1d3   :  { %v709_v37 = vpop.f32.mrf.mxu1 }
 0x1d4   :  { %v713_v38 = vpack.c.bf16 %v712_v36, %v712_v36 }
 0x1d5   :  { %v1079_v39 = vpop.f32.mrf.mxu1 }
 0x1d6   :  { %1089 = vmatmul.mubr.msk.bf16.vlgmr.msra.gmra.mxu1 %vm668_vm2, %v713_v38 }
 0x296   :  { %v789_v44 = vpop.f32.mrf.mxu1 }
 0x297   :  { %v790_v45 = vadd.f32 %v967_v42, %v789_v44 }
 0x298   :  { %v1090_v46 = vpop.f32.mrf.mxu1 }
 0x299   :  { %v795_v47 = vmax.f32 %v790_v45, 0.0 }
 0x29a   :  { %v792_v48 = vpop.f32.mrf.mxu1 }
 0x29b   :  { %v796_v49 = vpack.c.bf16 %v795_v47, %v795_v47 }
 0x29c   :  { %v1091_v50 = vpop.f32.mrf.mxu1 }
 0x29d   :  { %1101 = vmatmul.mubr.msk.bf16.vlgmr.msra.gmra.mxu0 %vm668_vm2, %v796_v49 }
 0x35d   :  { %v872_v51 = vpop.f32.mrf.mxu0 }
 0x35e   :  { %v873_v52 = vadd.f32 %v973_v43, %v872_v51 }
 0x35f   :  { %v1102_v53 = vpop.f32.mrf.mxu0 }
 0x360   :  { %878 = vmax.xlane.f32.xlu0 %v873_v52 }
 0x361   :  { %v875_v54 = vpop.f32.mrf.mxu0 }
 0x363   :  { %v1103_v55 = vpop.f32.mrf.mxu0 }
 0x3e9   :  { %v879_v56 = vpop.xlane.xlu0 %878 }
 0x3ea   :  { %v880_v57 = vsub.f32 %v873_v52, %v879_v56 }
 0x3ec   :  { %v881_v58 = vmul.f32 1.442695, %v880_v57 }
 0x3ee   :  { %1175 = vpow2.f32 %v881_v58 }
 0x3fb   :  { %v1176_v59 = vpop.eup %1175 }
 0x3fc   :  { %883 = vadd.xlane.f32.xlu0 %v1176_v59 }
 0x485   :  { %v884_v60 = vpop.xlane.xlu0 %883 }
 0x486   :  { %1177 = vlog2.f32 %v884_v60 }
 0x493   :  { %v1178_v61 = vpop.eup %1177 }
 0x494   :  { %v886_v62 = vmul.f32 0.6931472, %v1178_v61 }
 0x496   :  { %v887_v63 = vsub.f32 %v880_v57, %v886_v62 }
 0x498   :  { %888 = vst [vmem:[#allocation2] sm:$0xff] %v887_v63 }
 0x499   :  { %1190 = shalt.err (!%p1187_p4)
}
 0x49a   :  { %898 = dma.vmem_to_hbm [thread:$0]  %s896_s7, 128, %s1497_s9, [#allocation3]  }
 0x49b   :  { %1199 = dma.done.wait [#allocation3], 128  }
 0x49c   :  { %1200 = vsyncadd [#allocation3], 4294967168 }
 0x49d   :  { %902 = vsyncpa [#allocation3], 1 }

</bundles_post_ra>
